<compile_context>
chip_gen: v5e
topology: v5e:2x2
jax: 0.10.0
libtpu: 0.0.40
codegen_flags: <defaults>
</compile_context>

<pallas_src>
import functools

import jax
import jax.numpy as jnp
from jax.experimental import pallas as pl
from jax.experimental.pallas import tpu as pltpu


def _round_up(n, m):
    return (n + m - 1) // m * m


def _ei_linear_kernel(wt_ref, b_ref, x_ref, o_ref):
    """One grid step: o = x_tile @ eff_t + b.

    wt_ref: (Hp, Hp)  precomputed (|W| * mask)^T, zero-padded to 128 lanes
    b_ref : (1, Hp)   bias (zero-padded)
    x_ref : (TM, Hp)  row tile of the flattened, column-padded input
    o_ref : (TM, Hp)  row tile of the output
    """
    o_ref[...] = (jnp.dot(x_ref[...], wt_ref[...],
                          preferred_element_type=jnp.float32)
                  + b_ref[...])


def _pick_row_tile(n_rows, h_pad, row_tile):
    """Row tile: sublane-aligned, >=2 grid steps when possible, VMEM-safe."""
    tm = min(row_tile, _round_up(max(n_rows, 1), 8))
    # Ensure >= 2 grid steps when the batch allows it so the "parallel" row
    # axis actually shards across v7x's two TensorCores.
    if tm >= n_rows and n_rows > 8:
        tm = _round_up((n_rows + 1) // 2, 8)
    # Shrink tm until resident weight + double-buffered x/o tiles fit a
    # conservative VMEM budget (safe on v7x's 64 MiB physical VMEM).
    budget = 48 * 1024 * 1024

    def vmem_bytes(t):
        return (2 * h_pad * h_pad * 4      # weight (worst case double-buffered)
                + 2 * 8 * h_pad * 4        # bias block (sublane-padded)
                + 4 * t * h_pad * 4)       # double-buffered x and o tiles

    while tm > 8 and vmem_bytes(tm) > budget:
        tm = max(8, _round_up(tm // 2, 8))
    return tm, vmem_bytes(tm)


def ei_rec_linear(x, weight, bias, e_size, *, row_tile=512):
    """EIRecLinear forward.

    x:      (..., H) float32
    weight: (H, H)   float32 (PyTorch layout: out_features x in_features)
    bias:   (H,) float32 or None
    """
    H = weight.shape[0]
    orig_lead = x.shape[:-1]

    # --- Host-side precompute: eff_t = (|W| * mask)^T, done ONCE (fused XLA).
    col = jnp.arange(H)
    sign = jnp.where(col < e_size, 1.0, -1.0).astype(jnp.float32)
    mask = sign[None, :] * (1.0 - jnp.eye(H, dtype=jnp.float32))
    eff = jnp.abs(jnp.asarray(weight, jnp.float32)) * mask       # eff[n, k]
    eff_t = eff.T                                                # y = x @ eff_t

    # --- Pad the lane dimension H up to a multiple of 128 (lane-dense blocks).
    Hp = _round_up(H, 128)
    if Hp != H:
        eff_t = jnp.pad(eff_t, ((0, Hp - H), (0, Hp - H)))
    if bias is None:
        b2 = jnp.zeros((1, Hp), jnp.float32)
    else:
        b2 = jnp.zeros((1, Hp), jnp.float32).at[0, :H].set(
            jnp.asarray(bias, jnp.float32))

    # --- Flatten leading dims, pad columns and rows.
    x2 = x.reshape(-1, H).astype(jnp.float32)
    n_rows = x2.shape[0]
    if Hp != H:
        x2 = jnp.pad(x2, ((0, 0), (0, Hp - H)))

    tm, vmem_need = _pick_row_tile(n_rows, Hp, row_tile)
    n_pad = _round_up(max(n_rows, 1), tm)
    if n_pad != n_rows:
        x2 = jnp.pad(x2, ((0, n_pad - n_rows), (0, 0)))

    vmem_limit = int(min(64 * 1024 * 1024, max(vmem_need + (2 << 20), 4 << 20)))

    # TODO(synk): for very large H (Hp^2 * 4 B * 2 > ~48 MiB, i.e. H >~ 2.5k)
    # the resident weight no longer fits v7x's 64 MiB VMEM; add a second grid
    # axis tiling the weight over output columns (N) with an f32 accumulator.

    grid_spec = pltpu.PrefetchScalarGridSpec(
        num_scalar_prefetch=0,
        grid=(n_pad // tm,),
        in_specs=[
            pl.BlockSpec((Hp, Hp), lambda i: (0, 0)),          # eff_t (resident)
            pl.BlockSpec((1, Hp), lambda i: (0, 0)),           # bias  (resident)
            pl.BlockSpec((tm, Hp), lambda i: (i, 0)),          # x row tile
        ],
        out_specs=pl.BlockSpec((tm, Hp), lambda i: (i, 0)),    # y row tile
    )

    out = pl.pallas_call(
        _ei_linear_kernel,
        out_shape=jax.ShapeDtypeStruct((n_pad, Hp), jnp.float32),
        grid_spec=grid_spec,
        compiler_params=pltpu.CompilerParams(
            dimension_semantics=("parallel",),                 # rows independent
            vmem_limit_bytes=vmem_limit),
    )(eff_t, b2, x2)

    return out[:n_rows, :H].reshape(orig_lead + (H,))


def ei_rec_linear_ref(x, weight, bias, e_size):
    """Pure-JAX reference with identical semantics to the PyTorch module."""
    H = weight.shape[0]
    sign = jnp.where(jnp.arange(H) < e_size, 1.0, -1.0)
    mask = jnp.broadcast_to(sign[None, :], (H, H)) * (1.0 - jnp.eye(H, dtype=jnp.float32))
    eff = jnp.abs(weight) * mask
    y = jnp.matmul(x, eff.T, precision=jax.lax.Precision.HIGHEST)
    if bias is not None:
        y = y + bias
    return y


def init_params(key, hidden_size, e_prop):
    """Deterministic init mirroring EIRecLinear.reset_parameters (no torch)."""
    e_size = int(e_prop * hidden_size)
    i_size = hidden_size - e_size
    kw, kb = jax.random.split(key)

    # kaiming_uniform_(a=sqrt(5)) on an (H, H) weight -> U(-1/sqrt(H), 1/sqrt(H)).
    bound = 1.0 / float(hidden_size) ** 0.5
    weight = jax.random.uniform(kw, (hidden_size, hidden_size),
                                jnp.float32, -bound, bound)
    # weight[:, :e_size] /= e_size / i_size
    col_scale = jnp.where(jnp.arange(hidden_size) < e_size,
                          i_size / e_size, 1.0).astype(jnp.float32)
    weight = weight * col_scale[None, :]

    # bias ~ U(-1/sqrt(fan_in), 1/sqrt(fan_in)), fan_in = hidden_size.
    bias = jax.random.uniform(kb, (hidden_size,), jnp.float32, -bound, bound)
    return weight, bias, e_size


if __name__ == "__main__":
    hidden_size = 32
    e_prop = 0.75          # e_size = 24, i_size = 8
    T, B = 8, 2            # leading dims: (seq, batch, hidden)

    key = jax.random.PRNGKey(0)
    kx, kp = jax.random.split(key)

    weight, bias, e_size = init_params(kp, hidden_size, e_prop)
    x = jax.random.normal(kx, (T, B, hidden_size), jnp.float32)

    out = ei_rec_linear(x, weight, bias, e_size)
    out = jax.block_until_ready(out)

    ref = ei_rec_linear_ref(x, weight, bias, e_size)

    assert out.shape == (T, B, hidden_size)
    assert jnp.allclose(out, ref, atol=1e-5, rtol=1e-5), \
        float(jnp.max(jnp.abs(out - ref)))

    print("KERNEL_OK")
</pallas_src>

<mosaic_0001>
module attributes {stable_mosaic.version = 11 : i64} {
  func.func @_ei_linear_kernel(%arg0: i32, %arg1: memref<128x128xf32, #tpu.memory_space<vmem>>, %arg2: memref<1x128xf32, #tpu.memory_space<vmem>>, %arg3: memref<8x128xf32, #tpu.memory_space<vmem>>, %arg4: memref<8x128xf32, #tpu.memory_space<vmem>>) attributes {dimension_semantics = [#tpu.dimension_semantics<parallel>], iteration_bounds = array<i64: 2>, scalar_prefetch = 0 : i64, scratch_operands = 0 : i64, tpu.core_type = #tpu.core_type<tc>, window_params = [{pipeline_mode = #tpu.pipeline_mode<synchronous>, transform_indices = @transform_0, window_bounds = array<i64: 128, 128>}, {pipeline_mode = #tpu.pipeline_mode<synchronous>, transform_indices = @transform_1, window_bounds = array<i64: 1, 128>}, {transform_indices = @transform_2, window_bounds = array<i64: 8, 128>}, {transform_indices = @transform_3, window_bounds = array<i64: 8, 128>}]} {
    %c0 = arith.constant 0 : index
    %c0_0 = arith.constant 0 : index
    %0 = vector.load %arg3[%c0, %c0_0] : memref<8x128xf32, #tpu.memory_space<vmem>>, vector<8x128xf32>
    %c0_1 = arith.constant 0 : index
    %c0_2 = arith.constant 0 : index
    %1 = vector.load %arg1[%c0_1, %c0_2] : memref<128x128xf32, #tpu.memory_space<vmem>>, vector<128x128xf32>
    %cst = arith.constant dense<0.000000e+00> : vector<8x128xf32>
    %2 = tpu.matmul %0, %1, %cst {dimension_numbers = #tpu.dot_dimension_numbers<[1], [0], [0], [1], [0, 0, 1, 1], [], []>} : vector<8x128xf32>, vector<128x128xf32>, vector<8x128xf32> -> vector<8x128xf32>
    %c0_3 = arith.constant 0 : index
    %c0_4 = arith.constant 0 : index
    %3 = vector.load %arg2[%c0_3, %c0_4] : memref<1x128xf32, #tpu.memory_space<vmem>>, vector<1x128xf32>
    %4 = vector.broadcast %3 : vector<1x128xf32> to vector<8x128xf32>
    %5 = arith.addf %2, %4 : vector<8x128xf32>
    %c0_5 = arith.constant 0 : index
    %c0_6 = arith.constant 0 : index
    %6 = vector.load %arg4[%c0_5, %c0_6] : memref<8x128xf32, #tpu.memory_space<vmem>>, vector<8x128xf32>
    tpu.vector_store %arg4[%c0_5, %c0_6], %5 {strides = array<i32>} : memref<8x128xf32, #tpu.memory_space<vmem>>, vector<8x128xf32>,
    return
  }
  func.func @transform_0(%arg0: i32) -> (i32, i32) {
    %c0_i32 = arith.constant 0 : i32
    %c0_i32_0 = arith.constant 0 : i32
    %c0_i32_1 = arith.constant 0 : i32
    return %c0_i32, %c0_i32_0 : i32, i32
  }
  func.func @transform_1(%arg0: i32) -> (i32, i32) {
    %c0_i32 = arith.constant 0 : i32
    %c0_i32_0 = arith.constant 0 : i32
    %c0_i32_1 = arith.constant 0 : i32
    return %c0_i32, %c0_i32_0 : i32, i32
  }
  func.func @transform_2(%arg0: i32) -> (i32, i32) {
    %c0_i32 = arith.constant 0 : i32
    %c0_i32_0 = arith.constant 0 : i32
    return %arg0, %c0_i32 : i32, i32
  }
  func.func @transform_3(%arg0: i32) -> (i32, i32) {
    %c0_i32 = arith.constant 0 : i32
    %c0_i32_0 = arith.constant 0 : i32
    return %arg0, %c0_i32 : i32, i32
  }
}

</mosaic_0001>

<bundles_post_ra>
// kernel: tpu_custom_call.1
= control target key start
LH: loop header
LB: loop body
LE: loop exit
PB: predicated region body
PF: predicated region fallthrough
CT: control target
= control target key end

     0   :  { %8 = vsyncpa [#allocation3], 0  ;;  %s798_s0 = inlined_call_operand.hbm [shape: f32[128,128], index: 0, kind: input, shape index: {}]   ;;  %s799_s1 = inlined_call_operand.hbm [shape: f32[1,128], index: 1, kind: input, shape index: {}]   ;;  %s800_s2 = inlined_call_operand.hbm [shape: f32[16,128], index: 2, kind: input, shape index: {}]   ;;  %s801_s3 = inlined_call_operand.hbm [shape: f32[16,128], index: 3, kind: output, shape index: {}]  }
   0x1   :  { %9 = vsyncpa [#allocation6], 0 }
   0x2   :  { %10 = vsyncpa [#allocation4], 0 }
   0x3   :  { %12 = vsyncpa [#allocation4 + $0x1], 0  ;;  %s640_s12 = smov 0   ;;  %s642_s13 = smov 0  }
   0x4   :  { %s644_s14 = smov 0   ;;  %s646_s15 = smov 0  }
   0x5 LB: > { %s128_s18 = sshll.u32 %s798_s0, 4  ;;  %s664_s19 = sadd.s32 4294967295, %s614_s15   ;;  %s614_s15 = sphi %s646_s15, %s812_s15   ;;  %s610_s14 = sphi %s644_s14, %s811_s14   ;;  %s606_s13 = sphi %s642_s13, %s810_s13   ;;  %s602_s12 = sphi %s640_s12, %s809_s12   ;;  %s129_s18 = int_to_ptr.hbm [resolvable:$true] %s128_s18 }
   0x6   : > { %p365_p0 = scmp.ge.s32.totalorder %s614_s15, 1  ;;  %p81_p1 = scmp.eq.s32.totalorder %s664_s19, 0 }
   0x7   : > { %p104_p2 = scmp.eq.s32.totalorder %s664_s19, 1  ;;  %p117_p3 = scmp.lt.s32.totalorder %s614_s15, 3 }
   0x8   : > { %s616_s21 = smov [#allocation2]   ;;  %s143_s25 = sshll.u32 %s799_s1, 4  ;;  %s144_s25 = int_to_ptr.hbm [resolvable:$true] %s143_s25 }
   0x9   : > { %p670_p4 = pnand %p365_p0, %p117_p3  ;;  %s130_s22 = sshll.u32 %s616_s21, 4  ;;  %s131_s22 = int_to_ptr.vmem [resolvable:$true] %s130_s22 }
   0xa   : > { %s617_s26 = smov [#allocation5]   ;;  %s618_s28 = smov 128  }
   0xb   : > { %p392_p5 = pneg %p670_p4  ;;  %s145_s27 = sshll.u32 %s617_s26, 4  ;;  %s146_s27 = int_to_ptr.vmem [resolvable:$true] %s145_s27 }
   0xc   : > { %s619_s29 = smov 8   ;;  %s364_s30 = sadd.s32 4294967294, %s614_s15  }
   0xd   : > { %p393_p7 = pnand %p392_p5, %p81_p1  ;;  %s684_s4 = sadd.s32 1, %s614_s15  }
   0xe   : > { %s67_s5 = sadd.s32 1, %s610_s14  ;;  %s64_s6 = ssub.s32 %s614_s15, %s684_s4 }
   0xf   : > { %395 = dma.hbm_to_vmem [thread:$0]  (!%p393_p7), %s129_s18, 2048, %s131_s22, [#allocation3], %s618_s28, %s618_s28, %s619_s29  }
  0x10   : > { %398 = dma.hbm_to_vmem [thread:$0]  (!%p393_p7), %s144_s25, 16, %s146_s27, [#allocation6]  }
  0x11   : > { %p74_p8 = scmp.ne.s32.totalorder %s610_s14, %s606_s13  ;;  %p65_p9 = scmp.eq.s32.totalorder %s64_s6, 0 }
  0x12   : > { %p75_p10 = scmp.eq.s32.totalorder %s614_s15, 0  ;;  %p80_p11 = scmp.ne.s32.totalorder %s606_s13, %s602_s12 }
  0x13   : > { %p696_p12 = por %p104_p2, %p74_p8  ;;  %p110_p3 = scmp.eq.s32.totalorder %s364_s30, 1 }
  0x14   : > { %s701_s8 = scalar_select %p65_p9, %s610_s14, %s67_s5  }
  0x15   : > { %p705_p13 = por %p81_p1, %p80_p11  ;;  %p709_p0 = por %p75_p10, %p74_p8 }
  0x16   : > { %p409_p5 = scmp.lt.s32.totalorder %s614_s15, 2  ;;  %s158_s11 = sand.u32 1, %s610_s14  }
  0x17   : > { %p715_p7 = por %p110_p3, %p80_p11  ;;  %s156_s17 = sand.u32 1, %s614_s15  }
  0x18   : > { %s369_s18 = sshll.u32 %s158_s11, 3  ;;  %s370_s21 = sshll.u32 %s614_s15, 3 }
  0x19   : > { %s164_s24 = scalar_lea.hbm %s800_s2, %s370_s21  ;;  %s160_s26 = scalar_lea.vmem [#allocation7], %s369_s18 }
  0x1a   : > { %s166_s25 = sshll.u32 %s164_s24, 4  ;;  %s168_s27 = sshll.u32 %s160_s26, 4  ;;  %s167_s25 = int_to_ptr.hbm [resolvable:$true] %s166_s25  ;;  %s169_s27 = int_to_ptr.vmem [resolvable:$true] %s168_s27 }
  0x1b   : > { %p726_p2 = pnand %p409_p5, %p709_p0  ;;  %s157_s29 = scalar_lea.sflag [#allocation3], %s156_s17 }
  0x1c   : > { %s510_s30 = sshra.s32 %s167_s25, 4  ;;  %s517_s18 = scalar_lea.hbm %s800_s2, 16  ;;  %s511_s30 = int_to_ptr.hbm [resolvable:$true] %s510_s30 }
  0x1d   : > { %s512_s5 = scalar_lea.hbm %s511_s30, 8  ;;  %p514_p9 = pneg %p726_p2 }
  0x1e   : > { %p513_p8 = scmp.ne.s32.totalorder %s511_s30, %s512_s5  ;;  %p518_p0 = scmp.lt.s32.totalorder %s511_s30, %s800_s2 }
  0x1f   : > { %p519_p3 = scmp.lt.s32.totalorder %s517_s18, %s512_s5 }
  0x20   : > { %p515_p10 = pnand %p514_p9, %p513_p8 }
  0x21   : > { %p520_p5 = por %p519_p3, %p518_p0 }
  0x22   : > { %p516_p11 = pneg %p515_p10 }
  0x24   : > { %p521_p6 = pnand %p520_p5, %p516_p11 }
  0x26   : > { %524 = shalt.err (!%p521_p6)
}
  0x27   : > { %402 = dma.hbm_to_vmem [thread:$0]  (!%p726_p2), %s167_s25, 128, %s169_s27, %s157_s29  }
  0x28   : > { %177 = sbr.rel (%p670_p4) target bundleno = 215 (0xd7), region = 32 }
  0x2d   : > { %585 = dma.done.wait (%p81_p1), [#allocation3], 2048  }
  0x2e   : > { %587 = vsyncadd (%p81_p1), [#allocation3], 4294965248 }
  0x2f   : > { %589 = dma.done.wait (%p81_p1), [#allocation6], 16  }
  0x30   : > { %591 = vsyncadd (%p81_p1), [#allocation6], 4294967280  ;;  %s189_s17 = sand.u32 1, %s664_s19   ;;  %s191_s22 = sand.u32 1, %s606_s13  }
  0x31   : > { %s754_s20 = sshll.u32 %s191_s22, 3  ;;  %s190_s23 = scalar_lea.sflag [#allocation3], %s189_s17 }
  0x32   : > { %s193_s24 = scalar_lea.vmem [#allocation7], %s754_s20 }
  0x33   : > { %593 = dma.done.wait (%p705_p13), %s190_s23, 128  }
  0x34   : > { %595 = vsyncadd (%p705_p13), %s190_s23, 4294967168  ;;  %v233_v0 = vld [vmem:[#allocation2 + $0x78] sm:$0xff]  ;;  %v232_v1 = vld [vmem:[#allocation2 + $0x70] sm:$0xff]  ;;  %s377_s9 = sshll.u32 %s664_s19, 3  ;;  %s216_s28 = scalar_lea.vmem [#allocation8], %s754_s20 }
  0x35   : > { %238 = vmatpush.msra.mxu0 %v233_v0  ;;  %v231_v2 = vld [vmem:[#allocation2 + $0x68] sm:$0xff]  ;;  %v230_v3 = vld [vmem:[#allocation2 + $0x60] sm:$0xff]  ;;  %v229_v4 = vld [vmem:[#allocation2 + $0x58] sm:$0xff]  ;;  %s270_s27 = scalar_lea.hbm %s801_s3, %s377_s9  ;;  %s272_s29 = sshll.u32 %s216_s28, 4  ;;  %s273_s29 = int_to_ptr.vmem [resolvable:$true] %s272_s29 }
  0x36   : > { %v228_v5 = vld [vmem:[#allocation2 + $0x50] sm:$0xff]  ;;  %v227_v6 = vld [vmem:[#allocation2 + $0x48] sm:$0xff]  ;;  %v226_v7 = vld [vmem:[#allocation2 + $0x40] sm:$0xff]  ;;  %s274_s30 = sshll.u32 %s270_s27, 4  ;;  %s260_s5 = scalar_lea.sflag [#allocation4], %s191_s22  ;;  %s275_s30 = int_to_ptr.hbm [resolvable:$true] %s274_s30 }
  0x37   : > { %239 = vmatpush.msra.mxu0 %v232_v1  ;;  %v225_v8 = vld [vmem:[#allocation2 + $0x38] sm:$0xff]  ;;  %v224_v9 = vld [vmem:[#allocation2 + $0x30] sm:$0xff]  ;;  %v223_v10 = vld [vmem:[#allocation2 + $0x28] sm:$0xff]  ;;  %s554_s6 = sshra.s32 %s275_s30, 4  ;;  %s560_s21 = scalar_lea.hbm %s801_s3, 16  ;;  %s555_s6 = int_to_ptr.hbm [resolvable:$true] %s554_s6 }
  0x38   : > { %v222_v11 = vld [vmem:[#allocation2 + $0x20] sm:$0xff]  ;;  %v221_v12 = vld [vmem:[#allocation2 + $0x18] sm:$0xff]  ;;  %v220_v13 = vld [vmem:[#allocation2 + $0x10] sm:$0xff]  ;;  %s556_s11 = scalar_lea.hbm %s555_s6, 8  ;;  %p561_p13 = scmp.lt.s32.totalorder %s555_s6, %s801_s3 }
  0x39   : > { %240 = vmatpush.msra.mxu0 %v231_v2  ;;  %v219_v14 = vld [vmem:[#allocation2 + $0x8] sm:$0xff]  ;;  %v218_v15 = vld [vmem:[#allocation2] sm:$0xff]  ;;  %p557_p1 = scmp.ne.s32.totalorder %s555_s6, %s556_s11  ;;  %p562_p2 = scmp.lt.s32.totalorder %s560_s21, %s556_s11 }
  0x3a   : > { %v217_v16 = vld [vmem:[%s193_s24] sm:$0xff]  ;;  %v449_v17 = vld [vmem:[#allocation5] ss:$0 sm:$0xff] }
  0x3b   : > { %241 = vmatpush.msra.mxu0 %v230_v3  ;;  %p558_p4 = pnand %p557_p1, %p696_p12  ;;  %p563_p8 = por %p562_p2, %p561_p13 }
  0x3d   : > { %242 = vmatpush.msra.mxu0 %v229_v4  ;;  %p559_p6 = pneg %p558_p4 }
  0x3f   : > { %243 = vmatpush.msra.mxu0 %v228_v5  ;;  %p564_p9 = pnand %p563_p8, %p559_p6 }
  0x41   : > { %244 = vmatpush.msra.mxu0 %v227_v6 }
  0x43   : > { %245 = vmatpush.msra.mxu0 %v226_v7 }
  0x45   : > { %246 = vmatpush.msra.mxu0 %v225_v8 }
  0x47   : > { %247 = vmatpush.msra.mxu0 %v224_v9 }
  0x49   : > { %248 = vmatpush.msra.mxu0 %v223_v10 }
  0x4b   : > { %249 = vmatpush.msra.mxu0 %v222_v11 }
  0x4d   : > { %250 = vmatpush.msra.mxu0 %v221_v12 }
  0x4f   : > { %251 = vmatpush.msra.mxu0 %v220_v13 }
  0x51   : > { %252 = vmatpush.msra.mxu0 %v219_v14 }
  0x53   : > { %253 = vmatpush.msra.mxu0 %v218_v15 }
  0x54   : > { %254 = vmatmul.f32.vlgmr.msra.gmra.mxu0 %v217_v16 }
  0xd1   : > { %v255_v18 = vpop.f32.mrf.mxu0 }
  0xd2   : > { %v256_v19 = vadd.f32 %v449_v17, %v255_v18 }
  0xd4   : > { %258 = vst [vmem:[%s216_s28] sm:$0xff] %v256_v19 }
  0xd5   : > { %567 = shalt.err (!%p564_p9)
}
  0xd6   : > { %390 = dma.vmem_to_hbm [thread:$0]  (%p696_p12), %s273_s29, 128, %s275_s30, %s260_s5  }
  0xd7 PF: > { %s286_s22 = sand.u32 1, %s602_s12   ;;  %p808_p10 = scmp.ge.s32.totalorder %s614_s15, 2 }
  0xd8   : > { %s287_s20 = scalar_lea.sflag [#allocation4], %s286_s22 }
  0xd9   : > { %p404_p11 = pnand %p808_p10, %p715_p7 }
  0xdb   : > { %p405_p0 = pneg %p404_p11 }
  0xdd   : > { %597 = dma.done.wait (%p405_p0), %s287_s20, 128  }
  0xde   : > { %599 = vsyncadd (%p405_p0), %s287_s20, 4294967168  ;;  %p15_p3 = scmp.ge.s32.totalorder %s684_s4, 4   ;;  %s809_s12 = smov %s606_s13 }
  0xdf   : > { %s810_s13 = smov %s610_s14  ;;  %s811_s14 = smov %s701_s8 }
  0xe0   : > { %s812_s15 = smov %s684_s4  ;;  %17 = sbr.rel (!%p15_p3) target bundleno = 5 (0x5), region = 84 }
  0xe5   :  { %293 = vsyncpa [#allocation3], 1 }
  0xe6   :  { %295 = vsyncpa [#allocation3 + $0x1], 1 }
  0xe7   :  { %296 = vsyncpa [#allocation6], 1 }
  0xe8   :  { %297 = vsyncpa [#allocation4], 1 }
  0xe9   :  { %299 = vsyncpa [#allocation4 + $0x1], 1 }

</bundles_post_ra>
